<compile_context>
chip_gen: v7x
topology: tpu7x:2x2x1
jax: 0.10.0
libtpu: 0.0.40
codegen_flags: <defaults>
</compile_context>

<pallas_src>
import functools

import jax
import jax.numpy as jnp
from jax.experimental import pallas as pl
from jax.experimental.pallas import tpu as pltpu


# ---------------------------------------------------------------------------
# Fused kernel: the whole MLP forward in one invocation.
# ---------------------------------------------------------------------------
def _fused_mlp_kernel(*refs):
    """refs = (x_ref, w0_ref, b0_ref, w1_ref, b1_ref, ..., o_ref).

    h = ReLU(h @ W_i + b_i) for every block.  Dots run on the MXU in the
    weights' dtype (bf16) with f32 accumulation; bias/ReLU stay f32.  All
    intermediate activations live in VMEM/vregs; only the final narrow
    (tile, n_actions) activation is stored.
    """
    x_ref = refs[0]
    o_ref = refs[-1]
    layer_refs = refs[1:-1]
    n_layers = len(layer_refs) // 2

    h = x_ref[...]                                    # compute dtype (bf16)
    for i in range(n_layers):
        w = layer_refs[2 * i][...]                    # (in_f, out_f), bf16
        b = layer_refs[2 * i + 1][...]                # (1, out_f),   f32
        acc = jnp.dot(h, w, preferred_element_type=jnp.float32) + b
        acc = jnp.maximum(acc, 0.0)                   # f32 epilogue
        h = acc if i == n_layers - 1 else acc.astype(w.dtype)
    o_ref[...] = h.astype(o_ref.dtype)


# ---------------------------------------------------------------------------
# pallas_call builders.
# ---------------------------------------------------------------------------
def _cost_estimate(batch, packed_flat, n_actions):
    n_layers = len(packed_flat) // 2
    flops = 0
    bytes_accessed = batch * packed_flat[0].shape[0] * packed_flat[0].dtype.itemsize
    bytes_accessed += batch * n_actions * 4            # true (unpadded) output
    for i in range(n_layers):
        w = packed_flat[2 * i]
        b = packed_flat[2 * i + 1]
        flops += 2 * batch * w.shape[0] * w.shape[1]
        bytes_accessed += w.size * w.dtype.itemsize + b.size * b.dtype.itemsize
    return pl.CostEstimate(flops=int(flops), transcendentals=0,
                           bytes_accessed=int(bytes_accessed))


def _gridless_call(x, packed_flat, n_actions):
    """Single invocation, no grid: everything whole-array in VMEM.

    The right default on single-TC v5e/v6e for moderate batch sizes (grid
    steps there are a sequential loop whose ~0.35 us/step overhead dwarfs
    the DMA for these tiny tiles).
    """
    B = x.shape[0]
    vmem = pl.BlockSpec(memory_space=pltpu.MemorySpace.VMEM)
    return pl.pallas_call(
        _fused_mlp_kernel,
        out_shape=jax.ShapeDtypeStruct((B, n_actions), jnp.float32),
        in_specs=[vmem] * (1 + len(packed_flat)),
        out_specs=vmem,
        cost_estimate=_cost_estimate(B, packed_flat, n_actions),
    )(x, *packed_flat)


def _tiled_call(x, packed_flat, batch_tile, n_actions):
    """Batch-tiled 'parallel' grid (large B / v7x megacore).

    Weights/bias use full-array blocks with a constant index_map so they stay
    VMEM-resident across grid steps.  Output block is the true narrow
    (batch_tile, n_actions) slab — no lane padding, no wrapper slice.
    """
    B, in_f = x.shape
    assert B % batch_tile == 0  # wrapper guarantees via padding
    grid = (B // batch_tile,)

    in_specs = [pl.BlockSpec((batch_tile, in_f), lambda i: (i, 0))]
    for arr in packed_flat:
        in_specs.append(pl.BlockSpec(arr.shape, lambda i: (0, 0)))
    out_specs = pl.BlockSpec((batch_tile, n_actions), lambda i: (i, 0))

    return pl.pallas_call(
        _fused_mlp_kernel,
        out_shape=jax.ShapeDtypeStruct((B, n_actions), jnp.float32),
        grid=grid,
        in_specs=in_specs,
        out_specs=out_specs,
        compiler_params=pltpu.CompilerParams(
            dimension_semantics=("parallel",)),
        cost_estimate=_cost_estimate(B, packed_flat, n_actions),
    )(x, *packed_flat)


@functools.partial(jax.jit, static_argnames=("batch_tile",))
def net_forward(x, packed_flat, *, batch_tile=None):
    """Fused Net forward.  Returns (B, n_actions) float32.

    batch_tile policy:
      * None (default): gridless whole-array call — use this on v5e/v6e and
        for any moderate B on v7x.
      * Very large B (hundreds of thousands of rows) on v6e/v7x: pick a tile
        >= ~2048 rows so the 'parallel' grid has ~4-8 steps and each step
        moves >= ~1 MiB; this also keeps VMEM within v7x's 64 MiB.
    Passing x already in bfloat16 avoids an extra convert pass before the
    kernel (board features are small integers, exact in bf16).
    """
    n_actions = packed_flat[-2].shape[1]       # last layer is NOT lane-padded
    in_f_pad = packed_flat[0].shape[0]         # sublane-aligned input width
    compute_dtype = packed_flat[0].dtype

    B = x.shape[0]
    xh = x.astype(compute_dtype)
    if xh.shape[1] != in_f_pad:                # zero-pad features (no-op n=4)
        xh = jnp.pad(xh, ((0, 0), (0, in_f_pad - xh.shape[1])))

    if batch_tile is None or batch_tile >= B:
        return _gridless_call(xh, packed_flat, n_actions)

    # Ragged batches: pad to a tile multiple (cheap: in_f_pad columns only),
    # run the grid, slice the few padded rows off the tiny (B, n_actions) out.
    pad_rows = (-B) % batch_tile
    if pad_rows:
        xh = jnp.pad(xh, ((0, pad_rows), (0, 0)))
    out = _tiled_call(xh, packed_flat, batch_tile, n_actions)
    if pad_rows:
        out = out[:B]
    return out


# ---------------------------------------------------------------------------
# Parameter construction / packing (done once, outside the jitted forward).
# ---------------------------------------------------------------------------
def init_net_params(key, n, n_actions=4, n_blocks=1, internal_size_f=1):
    """Deterministic init matching the PyTorch module's shapes.

    Returns a list of (W, b) with W in PyTorch layout (out_f, in_f).
    """
    n2 = n * n
    internal_size = n2 * internal_size_f
    params = []
    in_f, out_f = n2, internal_size
    for i in range(n_blocks):
        if i == n_blocks - 1:
            out_f = n_actions
        key, kw, kb = jax.random.split(key, 3)
        bound = 1.0 / jnp.sqrt(jnp.float32(in_f))     # nn.Linear default range
        W = jax.random.uniform(kw, (out_f, in_f), jnp.float32, -bound, bound)
        b = jax.random.uniform(kb, (out_f,), jnp.float32, -bound, bound)
        params.append((W, b))
        in_f = out_f
    return params


def pack_params(params, compute_dtype=jnp.bfloat16):
    """Pre-transpose weights to (in_f, out_f), cast to the MXU compute dtype,
    and zero-pad in/out widths (except the final out_f) to the sublane
    multiple.  Padded columns have zero weight and zero bias, so after ReLU
    they are exactly zero and feed zero into the (zero-row-padded) next layer.
    Biases stay float32 (epilogue is f32).  Returns (W0_t, b0, W1_t, b1, ...).
    """
    align = 16 if compute_dtype == jnp.bfloat16 else 8
    packed = []
    n = len(params)
    for i, (W, b) in enumerate(params):
        out_f, in_f = W.shape
        in_pad = (-in_f) % align
        out_pad = 0 if i == n - 1 else (-out_f) % align   # keep output narrow
        w_t = jnp.asarray(W, jnp.float32).T               # (in_f, out_f)
        w_t = jnp.pad(w_t, ((0, in_pad), (0, out_pad)))
        b2 = jnp.pad(jnp.asarray(b, jnp.float32).reshape(1, -1),
                     ((0, 0), (0, out_pad)))
        packed.extend((w_t.astype(compute_dtype), b2))
    return tuple(packed)


# ---------------------------------------------------------------------------
# Pure-JAX (float32) reference.
# ---------------------------------------------------------------------------
def net_forward_ref(x, params):
    h = jnp.asarray(x, jnp.float32)
    for W, b in params:
        h = jnp.maximum(h @ W.T + b, 0.0)
    return h


def _make_board_batch(key, batch, n2):
    """Integer-valued 'board' features (exactly representable in bf16)."""
    x = jnp.floor(jax.random.uniform(key, (batch, n2), jnp.float32, 0.0, 12.0))
    return x


if __name__ == "__main__":
    key = jax.random.PRNGKey(0)
    ATOL, RTOL = 0.25, 2e-2   # bf16 weight rounding vs f32 reference

    # ----- Config A: default 2048 board (n=4 -> 16 features), 1 block -----
    n, n_actions, n_blocks = 4, 4, 1
    key, k_params, k1, k2, k3 = jax.random.split(key, 5)
    params_a = init_net_params(k_params, n, n_actions=n_actions,
                               n_blocks=n_blocks, internal_size_f=1)
    packed_a = pack_params(params_a)

    # Case 1: modest batch -> gridless call (recommended on v5e/v6e).
    x1 = _make_board_batch(k1, 128, n * n).astype(jnp.bfloat16)
    out1 = jax.block_until_ready(net_forward(x1, packed_a, batch_tile=None))
    ref1 = net_forward_ref(x1.astype(jnp.float32), params_a)
    assert out1.shape == (128, n_actions), out1.shape
    assert jnp.allclose(out1, ref1, atol=ATOL, rtol=RTOL)

    # Case 2: large batch -> 'parallel' batch grid sized for >=2048-row tiles
    # (v7x megacore path); weights stay VMEM-resident across steps.
    x2 = _make_board_batch(k2, 4096, n * n).astype(jnp.bfloat16)
    out2 = jax.block_until_ready(net_forward(x2, packed_a, batch_tile=2048))
    ref2 = net_forward_ref(x2.astype(jnp.float32), params_a)
    assert out2.shape == (4096, n_actions), out2.shape
    assert jnp.allclose(out2, ref2, atol=ATOL, rtol=RTOL)

    # Case 3: ragged batch on the tiled path (wrapper pads to the tile).
    x3 = _make_board_batch(k3, 1000, n * n).astype(jnp.bfloat16)
    out3 = jax.block_until_ready(net_forward(x3, packed_a, batch_tile=512))
    ref3 = net_forward_ref(x3.astype(jnp.float32), params_a)
    assert out3.shape == (1000, n_actions), out3.shape
    assert jnp.allclose(out3, ref3, atol=ATOL, rtol=RTOL)

    # ----- Config B: non-aligned board (n=3 -> 9 features), 2 blocks -------
    # Exercises the sublane-alignment padding of x columns / hidden widths.
    n_b, blocks_b, isf_b = 3, 2, 2
    key, k_params_b, k4 = jax.random.split(key, 3)
    params_b = init_net_params(k_params_b, n_b, n_actions=n_actions,
                               n_blocks=blocks_b, internal_size_f=isf_b)
    packed_b = pack_params(params_b)

    x4 = _make_board_batch(k4, 64, n_b * n_b)      # f32 input: wrapper casts
    out4 = jax.block_until_ready(net_forward(x4, packed_b, batch_tile=None))
    ref4 = net_forward_ref(x4, params_b)
    assert out4.shape == (64, n_actions), out4.shape
    assert jnp.allclose(out4, ref4, atol=ATOL, rtol=RTOL)

    print("KERNEL_OK")
</pallas_src>

<mosaic_0001>
module attributes {stable_mosaic.version = 11 : i64} {
  func.func @_fused_mlp_kernel(%arg0: memref<128x16xbf16, #tpu.memory_space<vmem>>, %arg1: memref<16x4xbf16, #tpu.memory_space<vmem>>, %arg2: memref<1x4xf32, #tpu.memory_space<vmem>>, %arg3: memref<128x4xf32, #tpu.memory_space<vmem>>) attributes {dimension_semantics = [], scalar_prefetch = 0 : i64, scratch_operands = 0 : i64, tpu.core_type = #tpu.core_type<tc>} {
    %c0 = arith.constant 0 : index
    %c0_0 = arith.constant 0 : index
    %0 = vector.load %arg0[%c0, %c0_0] : memref<128x16xbf16, #tpu.memory_space<vmem>>, vector<128x16xbf16>
    %c0_1 = arith.constant 0 : index
    %c0_2 = arith.constant 0 : index
    %1 = vector.load %arg1[%c0_1, %c0_2] : memref<16x4xbf16, #tpu.memory_space<vmem>>, vector<16x4xbf16>
    %c0_3 = arith.constant 0 : index
    %c0_4 = arith.constant 0 : index
    %2 = vector.load %arg2[%c0_3, %c0_4] : memref<1x4xf32, #tpu.memory_space<vmem>>, vector<1x4xf32>
    %cst = arith.constant dense<0.000000e+00> : vector<128x4xf32>
    %3 = tpu.matmul %0, %1, %cst {dimension_numbers = #tpu.dot_dimension_numbers<[1], [0], [0], [1], [0, 0, 1, 1], [], []>} : vector<128x16xbf16>, vector<16x4xbf16>, vector<128x4xf32> -> vector<128x4xf32>
    %4 = vector.broadcast %2 : vector<1x4xf32> to vector<128x4xf32>
    %5 = arith.addf %3, %4 : vector<128x4xf32>
    %cst_5 = arith.constant 0.000000e+00 : f32
    %6 = vector.broadcast %cst_5 : f32 to vector<128x4xf32>
    %7 = arith.maximumf %5, %6 : vector<128x4xf32>
    %c0_6 = arith.constant 0 : index
    %c0_7 = arith.constant 0 : index
    %8 = vector.load %arg3[%c0_6, %c0_7] : memref<128x4xf32, #tpu.memory_space<vmem>>, vector<128x4xf32>
    tpu.vector_store %arg3[%c0_6, %c0_7], %7 {strides = array<i32>} : memref<128x4xf32, #tpu.memory_space<vmem>>, vector<128x4xf32>,
    return
  }
}

</mosaic_0001>

<bundles_post_ra>
// kernel: net_forward.1
= control target key start
LH: loop header
LB: loop body
LE: loop exit
PB: predicated region body
PF: predicated region fallthrough
CT: control target
= control target key end

     0   :  { %vm86_vm0 = vcmask 130048   ;;  %vm224_vm1 = vcmask 31744   ;;  %s423_s1 = inlined_call_operand.vmem [shape: bf16[16,4], index: 1, kind: input, shape index: {}]   ;;  %s424_s0 = inlined_call_operand.vmem [shape: bf16[128,16], index: 0, kind: input, shape index: {}]   ;;  %s425_s2 = inlined_call_operand.vmem [shape: f32[1,4], index: 2, kind: input, shape index: {}]   ;;  %s426_s3 = inlined_call_operand.vmem [shape: f32[128,4], index: 3, kind: output, shape index: {}]  }
   0x1   :  { %v292_v0 = vld [vmem:[%s423_s1] sm:$0xff]   ;;  %v295_v3 = vld [vmem:[%s424_s0 + $0x8] sm:$0xff]   ;;  %v297_v5 = vld [vmem:[%s424_s0 + $0x10] sm:$0xff]  }
   0x2   :  { %v293_v1 = vld [vmem:[%s424_s0] sm:$0xff]   ;;  %272 = vmatprep.subr.bf16.mxu0 %v292_v0  ;;  %290 = vmatprep.subr.bf16.mxu1 %v292_v0  ;;  %v296_v4 = vld [vmem:[%s424_s0 + $0x28] sm:$0xff]   ;;  %v298_v6 = vld [vmem:[%s424_s0 + $0x30] sm:$0xff]  }
   0x3   :  { %v294_v2 = vld [vmem:[%s424_s0 + $0x20] sm:$0xff]   ;;  %273 = vmatpush3.bf16.msra.mxu0 %v292_v0  ;;  %291 = vmatpush3.bf16.msra.mxu1 %v292_v0  ;;  %v299_v7 = vld [vmem:[%s424_s0 + $0x18] sm:$0xff]  }
   0x4   :  { %274 = vmatprep.mubr.msk.bf16.mxu0 %vm86_vm0, %v293_v1  ;;  %282 = vmatprep.mubr.msk.bf16.mxu1 %vm86_vm0, %v294_v2  ;;  %v300_v8 = vld [vmem:[%s424_s0 + $0x38] sm:$0xff]   ;;  %v245_v9 = vld [vmem:[%s425_s2] ss:$0 sm:$0xff] }
   0x6   :  { %275 = vmatmul.mubr.msk.bf16.vlgmr.msra.gmra.mrb[0].mxu0 %vm86_vm0, %v295_v3  ;;  %283 = vmatmul.mubr.msk.bf16.vlgmr.msra.gmra.mrb[0].mxu1 %vm86_vm0, %v296_v4 }
   0x7   :  { %278 = vmatprep.mubr.msk.bf16.mxu0 %vm86_vm0, %v297_v5  ;;  %286 = vmatprep.mubr.msk.bf16.mxu1 %vm86_vm0, %v298_v6 }
   0xe   :  { %279 = vmatmul.mubr.msk.bf16.gmra.mrb[4].mxu0 %vm86_vm0, %v299_v7  ;;  %287 = vmatmul.mubr.msk.bf16.gmra.mrb[4].mxu1 %vm86_vm0, %v300_v8 }
  0xd9   :  { %v276_v10 = vpop.f32.mrb[0].mxu0  ;;  %v284_v11 = vpop.f32.mrb[0].mxu1 }
  0xda   :  { %v154_v12 = vadd.f32 %v276_v10, %v245_v9  ;;  %v186_v13 = vadd.f32 %v284_v11, %v245_v9  ;;  %v145_v14 = vpop.f32.mrb[1].mxu0  ;;  %v177_v15 = vpop.f32.mrb[1].mxu1 }
  0xdb   :  { %v146_v16 = vadd.f32 %v245_v9, %v145_v14  ;;  %v178_v17 = vadd.f32 %v245_v9, %v177_v15  ;;  %v277_v18 = vpop.f32.mrb[2].mxu0  ;;  %v285_v19 = vpop.f32.mrb[2].mxu1 }
  0xdc   :  { %v210_v20 = vmax.f32 %v154_v12, 0.0  ;;  %v218_v21 = vmax.f32 %v186_v13, 0.0  ;;  %v157_v22 = vadd.f32 %v277_v18, %v245_v9  ;;  %v189_v23 = vadd.f32 %v285_v19, %v245_v9  ;;  %v148_v24 = vpop.f32.mrb[3].mxu0  ;;  %v180_v25 = vpop.f32.mrb[3].mxu1 }
  0xdd   :  { %v208_v26 = vmax.f32 %v146_v16, 0.0  ;;  %v216_v27 = vmax.f32 %v178_v17, 0.0  ;;  %v149_v28 = vadd.f32 %v245_v9, %v148_v24  ;;  %v181_v29 = vadd.f32 %v245_v9, %v180_v25 }
  0xde   :  { %227 = vst.msk [vmem:[%s426_s3 + $0x10] sm:$0xff] %vm224_vm1, %v210_v20  ;;  %235 = vst.msk [vmem:[%s426_s3 + $0x50] sm:$0xff] %vm224_vm1, %v218_v21  ;;  %v211_v30 = vmax.f32 %v157_v22, 0.0  ;;  %v219_v31 = vmax.f32 %v189_v23, 0.0 }
  0xdf   :  { %225 = vst.msk [vmem:[%s426_s3] sm:$0xff] %vm224_vm1, %v208_v26  ;;  %233 = vst.msk [vmem:[%s426_s3 + $0x40] sm:$0xff] %vm224_vm1, %v216_v27  ;;  %v209_v32 = vmax.f32 %v149_v28, 0.0  ;;  %v217_v33 = vmax.f32 %v181_v29, 0.0 }
  0xe0   :  { %228 = vst.msk [vmem:[%s426_s3 + $0x18] sm:$0xff] %vm224_vm1, %v211_v30  ;;  %236 = vst.msk [vmem:[%s426_s3 + $0x58] sm:$0xff] %vm224_vm1, %v219_v31 }
  0xe1   :  { %226 = vst.msk [vmem:[%s426_s3 + $0x8] sm:$0xff] %vm224_vm1, %v209_v32  ;;  %234 = vst.msk [vmem:[%s426_s3 + $0x48] sm:$0xff] %vm224_vm1, %v217_v33  ;;  %v280_v34 = vpop.f32.mrb[4].mxu0  ;;  %v288_v35 = vpop.f32.mrb[4].mxu1 }
  0xe2   :  { %v170_v36 = vadd.f32 %v280_v34, %v245_v9  ;;  %v202_v37 = vadd.f32 %v288_v35, %v245_v9  ;;  %v161_v38 = vpop.f32.mrb[5].mxu0  ;;  %v193_v39 = vpop.f32.mrb[5].mxu1 }
  0xe3   :  { %v162_v40 = vadd.f32 %v245_v9, %v161_v38  ;;  %v194_v41 = vadd.f32 %v245_v9, %v193_v39  ;;  %v281_v42 = vpop.f32.mrb[6].mxu0  ;;  %v289_v43 = vpop.f32.mrb[6].mxu1 }
  0xe4   :  { %v214_v44 = vmax.f32 %v170_v36, 0.0  ;;  %v222_v45 = vmax.f32 %v202_v37, 0.0  ;;  %v173_v46 = vadd.f32 %v281_v42, %v245_v9  ;;  %v205_v47 = vadd.f32 %v289_v43, %v245_v9  ;;  %v164_v48 = vpop.f32.mrb[7].mxu0  ;;  %v196_v49 = vpop.f32.mrb[7].mxu1 }
  0xe5   :  { %v212_v50 = vmax.f32 %v162_v40, 0.0  ;;  %v220_v51 = vmax.f32 %v194_v41, 0.0  ;;  %v165_v52 = vadd.f32 %v245_v9, %v164_v48  ;;  %v197_v53 = vadd.f32 %v245_v9, %v196_v49 }
  0xe6   :  { %231 = vst.msk [vmem:[%s426_s3 + $0x30] sm:$0xff] %vm224_vm1, %v214_v44  ;;  %239 = vst.msk [vmem:[%s426_s3 + $0x70] sm:$0xff] %vm224_vm1, %v222_v45  ;;  %v215_v54 = vmax.f32 %v173_v46, 0.0  ;;  %v223_v55 = vmax.f32 %v205_v47, 0.0 }
  0xe7   :  { %229 = vst.msk [vmem:[%s426_s3 + $0x20] sm:$0xff] %vm224_vm1, %v212_v50  ;;  %237 = vst.msk [vmem:[%s426_s3 + $0x60] sm:$0xff] %vm224_vm1, %v220_v51  ;;  %v213_v56 = vmax.f32 %v165_v52, 0.0  ;;  %v221_v57 = vmax.f32 %v197_v53, 0.0 }
  0xe8   :  { %232 = vst.msk [vmem:[%s426_s3 + $0x38] sm:$0xff] %vm224_vm1, %v215_v54  ;;  %240 = vst.msk [vmem:[%s426_s3 + $0x78] sm:$0xff] %vm224_vm1, %v223_v55 }
  0xe9   :  { %230 = vst.msk [vmem:[%s426_s3 + $0x28] sm:$0xff] %vm224_vm1, %v213_v56  ;;  %238 = vst.msk [vmem:[%s426_s3 + $0x68] sm:$0xff] %vm224_vm1, %v221_v57 }

</bundles_post_ra>
